<compile_context>
chip_gen: v7x
topology: tpu7x:2x2x1
jax: 0.10.0
libtpu: 0.0.40
codegen_flags: <defaults>
</compile_context>

<pallas_src>
import functools
import math

import jax
import jax.numpy as jnp
from jax import lax
from jax.experimental import pallas as pl
from jax.experimental.pallas import tpu as pltpu


def _round_up(x, m):
    return ((x + m - 1) // m) * m


def _intra_modal_kernel(x_ref, wqkv_ref, bqkv_ref, wo_ref, bo_ref, o_ref,
                        *, bb, n, d, n_valid, scale):
    """One grid step: `bb` batch elements, each an (n, d) (padded) token block."""
    x = x_ref[...]                                   # (bb*n, d), native dtype
    cdt = x.dtype                                    # compute dtype for MXU ops

    # --- fused Q|K|V projection: one tall, lane-dense matmul ---------------
    qkv = jnp.dot(x, wqkv_ref[...], preferred_element_type=jnp.float32)
    qkv = qkv + bqkv_ref[...]                        # bias kept in f32
    if n_valid != n:
        # Zero padded token rows so padded keys/values (which would otherwise
        # carry the bias) cannot leak into real outputs via the dense graph.
        pos = lax.broadcasted_iota(jnp.int32, (bb * n, 1), 0) % n
        qkv = jnp.where(pos < n_valid, qkv, 0.0)
    qkv = qkv.astype(cdt)                            # bf16 operands for bf16 inputs

    q = qkv[:, :d].reshape(bb, n, d)
    k = qkv[:, d:2 * d].reshape(bb, n, d)
    v = qkv[:, 2 * d:].reshape(bb, n, d)

    # --- CausalGraphLearning: sigmoid(Q K^T / sqrt(D)), transpose-free -----
    scores = lax.dot_general(
        q, k, dimension_numbers=(((2,), (2,)), ((0,), (0,))),
        preferred_element_type=jnp.float32) * scale              # (bb, n, n)
    graph = jax.nn.sigmoid(scores).astype(cdt)
    # TODO(synk): for very large N on v7x (64 MiB VMEM), tile scores/graph over
    # key blocks (accumulating h) instead of materializing the full (n, n).

    # --- CausalMechanism: graph @ V, then output projection -----------------
    h = lax.dot_general(
        graph, v, dimension_numbers=(((2,), (1,)), ((0,), (0,))),
        preferred_element_type=jnp.float32)                       # (bb, n, d)
    h = h.reshape(bb * n, d).astype(cdt)

    out = jnp.dot(h, wo_ref[...], preferred_element_type=jnp.float32)
    out = out + bo_ref[...]
    o_ref[...] = out.astype(o_ref.dtype)


def _vmem_capacity_bytes():
    try:
        return int(pltpu.get_tpu_info().vmem_capacity_bytes)
    except Exception:
        return 64 << 20          # conservative default (v7x per-TensorCore VMEM)


def _vmem_estimate(bb, n, d, itemsize):
    """Rough per-step live-set estimate (bytes), f32 accumulators included."""
    rows = bb * n
    io = 2 * (2 * rows * d * itemsize)                 # x + out, double-buffered
    w = (3 * d * d + d * d + 4 * d) * itemsize         # Wqkv, Wo, biases (single-buffered)
    inter = rows * 3 * d * (4 + itemsize)              # qkv f32 acc + cast copy
    inter += bb * n * n * (4 + itemsize)               # scores f32 + graph cast
    inter += rows * d * (4 + itemsize) + rows * d * 4  # h (+cast) + out staging
    return io + w + inter


def _pick_batch_tile(B, n_pad, d_pad, itemsize, vmem_budget_bytes, max_rows=2048):
    """Largest divisor bb of B keeping grid >= 2 (megacore / DMA-compute
    overlap), rows <= max_rows and the estimated live set under budget."""
    best = 1
    for bb in range(1, B + 1):
        if B % bb:
            continue
        if B >= 2 and bb > B // 2:      # keep grid >= 2
            continue
        if bb * n_pad > max_rows:
            continue
        if _vmem_estimate(bb, n_pad, d_pad, itemsize) <= vmem_budget_bytes:
            best = bb
    return best


def intra_modal_causal(features, params, batch_tile=None):
    """features: (B, N, D). params: dict of weights/biases. Returns (B, N, D)."""
    B, N, D = features.shape
    cdt = features.dtype
    itemsize = jnp.dtype(cdt).itemsize
    sub = 8 if itemsize >= 4 else (16 if itemsize == 2 else 32)
    Np = _round_up(N, sub)       # sublane-aligned tokens per batch element
    Dp = _round_up(D, 128)       # lane-dense feature dim (dense vst, MXU fill)

    # --- zero-pad params (exact: padded lanes/rows contribute 0) and fuse
    # Q|K|V into one (Dp, 3*Dp) weight so the projection is a single matmul.
    def pad_w(w):
        return jnp.pad(w, ((0, Dp - D), (0, Dp - D)))

    def pad_b(b):
        return jnp.pad(b, ((0, 0), (0, Dp - D)))

    w_qkv = jnp.concatenate(
        [pad_w(params["wq"]), pad_w(params["wk"]), pad_w(params["wv"])],
        axis=1).astype(cdt)
    b_qkv = jnp.concatenate(
        [pad_b(params["bq"]), pad_b(params["bk"]), pad_b(params["bv"])],
        axis=1).astype(jnp.float32)
    w_o = pad_w(params["wo"]).astype(cdt)
    b_o = pad_b(params["bo"]).astype(jnp.float32)

    x_p = features
    if Np != N or Dp != D:
        x_p = jnp.pad(features, ((0, 0), (0, Np - N), (0, Dp - D)))
    # Flatten batch into the row (sublane) axis: tall projection matmuls.
    x2 = x_p.reshape(B * Np, Dp)

    # --- generation-aware tiling + explicit scoped-VMEM limit ---------------
    vmem_cap = _vmem_capacity_bytes()
    if batch_tile is None:
        bb = _pick_batch_tile(B, Np, Dp, itemsize, int(0.4 * vmem_cap))
    else:
        bb = batch_tile
    assert B % bb == 0, "batch tile must divide batch"
    rows = bb * Np
    est = _vmem_estimate(bb, Np, Dp, itemsize)
    vmem_limit = int(min(0.9 * vmem_cap, max(32 << 20, 2 * est + (8 << 20))))

    kernel = functools.partial(_intra_modal_kernel, bb=bb, n=Np, d=Dp,
                               n_valid=N, scale=1.0 / math.sqrt(D))

    def build(single_buffer_weights):
        if single_buffer_weights:
            # Constant index_map -> one resident buffer is enough; saves the
            # second copy of every DxD weight (critical headroom on v7x).
            def const_spec(shape):
                return pl.BlockSpec(shape, lambda i: (0, 0),
                                    pipeline_mode=pl.Buffered(1))
        else:
            def const_spec(shape):
                return pl.BlockSpec(shape, lambda i: (0, 0))
        return pl.pallas_call(
            kernel,
            out_shape=jax.ShapeDtypeStruct((B * Np, Dp), cdt),
            grid_spec=pltpu.PrefetchScalarGridSpec(
                num_scalar_prefetch=0,
                grid=(B // bb,),
                in_specs=[pl.BlockSpec((rows, Dp), lambda i: (i, 0)),
                          const_spec((Dp, 3 * Dp)),   # fused Wqkv
                          const_spec((1, 3 * Dp)),    # fused bqkv
                          const_spec((Dp, Dp)),       # Wo
                          const_spec((1, Dp))],       # bo
                out_specs=pl.BlockSpec((rows, Dp), lambda i: (i, 0)),
            ),
            compiler_params=pltpu.CompilerParams(
                dimension_semantics=("parallel",),
                vmem_limit_bytes=vmem_limit),
        )

    args = (x2, w_qkv, b_qkv, w_o, b_o)
    try:
        out2 = build(True)(*args)
    except Exception:
        # pipeline_mode=Buffered(1) unsupported in this build: fall back to
        # default double-buffered constant weights (same math).
        out2 = build(False)(*args)

    return out2.reshape(B, Np, Dp)[:, :N, :D]


def init_params(key, feature_dim):
    """Deterministic PyTorch-Linear-style init: U(-1/sqrt(D), 1/sqrt(D))."""
    D = feature_dim
    bound = 1.0 / math.sqrt(D)
    keys = jax.random.split(key, 8)

    def u(k, shape):
        return jax.random.uniform(k, shape, jnp.float32, -bound, bound)

    return {
        "wq": u(keys[0], (D, D)), "bq": u(keys[1], (1, D)),
        "wk": u(keys[2], (D, D)), "bk": u(keys[3], (1, D)),
        "wv": u(keys[4], (D, D)), "bv": u(keys[5], (1, D)),
        "wo": u(keys[6], (D, D)), "bo": u(keys[7], (1, D)),
    }


def _reference(features, params):
    """Pure-JAX reference for correctness check."""
    x = features.astype(jnp.float32)
    D = x.shape[-1]
    q = x @ params["wq"] + params["bq"]
    k = x @ params["wk"] + params["bk"]
    graph = jax.nn.sigmoid(jnp.einsum("bnd,bmd->bnm", q, k) / math.sqrt(D))
    v = x @ params["wv"] + params["bv"]
    h = jnp.einsum("bnm,bmd->bnd", graph, v)
    return h @ params["wo"] + params["bo"]


if __name__ == "__main__":
    B, N, D = 2, 8, 32
    key = jax.random.PRNGKey(0)
    k_x, k_p = jax.random.split(key)
    features = jax.random.normal(k_x, (B, N, D), jnp.float32)
    params = init_params(k_p, D)

    out = intra_modal_causal(features, params)
    out = jax.block_until_ready(out)

    ref = _reference(features, params)
    assert out.shape == (B, N, D)
    assert jnp.allclose(out, ref, atol=1e-4, rtol=1e-4), "mismatch vs reference"

    print("KERNEL_OK")
</pallas_src>

<mosaic_0001>
module attributes {stable_mosaic.version = 11 : i64} {
  func.func @_intra_modal_kernel(%arg0: i32, %arg1: memref<8x128xf32, #tpu.memory_space<vmem>>, %arg2: memref<128x384xf32, #tpu.memory_space<vmem>>, %arg3: memref<1x384xf32, #tpu.memory_space<vmem>>, %arg4: memref<128x128xf32, #tpu.memory_space<vmem>>, %arg5: memref<1x128xf32, #tpu.memory_space<vmem>>, %arg6: memref<8x128xf32, #tpu.memory_space<vmem>>) attributes {dimension_semantics = [#tpu.dimension_semantics<parallel>], iteration_bounds = array<i64: 2>, scalar_prefetch = 0 : i64, scratch_operands = 0 : i64, tpu.core_type = #tpu.core_type<tc>, window_params = [{transform_indices = @transform_0, window_bounds = array<i64: 8, 128>}, {pipeline_mode = #tpu.pipeline_mode<synchronous>, transform_indices = @transform_1, window_bounds = array<i64: 128, 384>}, {pipeline_mode = #tpu.pipeline_mode<synchronous>, transform_indices = @transform_2, window_bounds = array<i64: 1, 384>}, {pipeline_mode = #tpu.pipeline_mode<synchronous>, transform_indices = @transform_3, window_bounds = array<i64: 128, 128>}, {pipeline_mode = #tpu.pipeline_mode<synchronous>, transform_indices = @transform_4, window_bounds = array<i64: 1, 128>}, {transform_indices = @transform_5, window_bounds = array<i64: 8, 128>}]} {
    %c0 = arith.constant 0 : index
    %c0_0 = arith.constant 0 : index
    %0 = vector.load %arg1[%c0, %c0_0] : memref<8x128xf32, #tpu.memory_space<vmem>>, vector<8x128xf32>
    %c0_1 = arith.constant 0 : index
    %c0_2 = arith.constant 0 : index
    %1 = vector.load %arg2[%c0_1, %c0_2] : memref<128x384xf32, #tpu.memory_space<vmem>>, vector<128x384xf32>
    %cst = arith.constant dense<0.000000e+00> : vector<8x384xf32>
    %2 = tpu.matmul %0, %1, %cst {dimension_numbers = #tpu.dot_dimension_numbers<[1], [0], [0], [1], [0, 0, 1, 1], [], []>} : vector<8x128xf32>, vector<128x384xf32>, vector<8x384xf32> -> vector<8x384xf32>
    %c0_3 = arith.constant 0 : index
    %c0_4 = arith.constant 0 : index
    %3 = vector.load %arg3[%c0_3, %c0_4] : memref<1x384xf32, #tpu.memory_space<vmem>>, vector<1x384xf32>
    %4 = vector.broadcast %3 : vector<1x384xf32> to vector<8x384xf32>
    %5 = arith.addf %2, %4 : vector<8x384xf32>
    %6 = vector.extract_strided_slice %5 {offsets = [0, 0], sizes = [8, 128], strides = [1, 1]} : vector<8x384xf32> to vector<8x128xf32>
    %7 = vector.shape_cast %6 : vector<8x128xf32> to vector<1x8x128xf32>
    %8 = vector.extract_strided_slice %5 {offsets = [0, 128], sizes = [8, 128], strides = [1, 1]} : vector<8x384xf32> to vector<8x128xf32>
    %9 = vector.shape_cast %8 : vector<8x128xf32> to vector<1x8x128xf32>
    %10 = vector.extract_strided_slice %5 {offsets = [0, 256], sizes = [8, 128], strides = [1, 1]} : vector<8x384xf32> to vector<8x128xf32>
    %11 = vector.shape_cast %10 : vector<8x128xf32> to vector<1x8x128xf32>
    %cst_5 = arith.constant dense<0.000000e+00> : vector<1x8x8xf32>
    %12 = tpu.matmul %7, %9, %cst_5 {dimension_numbers = #tpu.dot_dimension_numbers<[2], [2], [1], [1], [0, 0, 0, 1, 1, 1], [0], [0]>} : vector<1x8x128xf32>, vector<1x8x128xf32>, vector<1x8x8xf32> -> vector<1x8x8xf32>
    %cst_6 = arith.constant 0.176776692 : f32
    %13 = vector.broadcast %cst_6 : f32 to vector<1x8x8xf32>
    %14 = arith.mulf %12, %13 : vector<1x8x8xf32>
    %15 = arith.negf %14 : vector<1x8x8xf32>
    %16 = math.exp %15 : vector<1x8x8xf32>
    %cst_7 = arith.constant 1.000000e+00 : f32
    %17 = vector.broadcast %cst_7 : f32 to vector<1x8x8xf32>
    %18 = arith.addf %17, %16 : vector<1x8x8xf32>
    %19 = arith.divf %17, %18 : vector<1x8x8xf32>
    %cst_8 = arith.constant dense<0.000000e+00> : vector<1x8x128xf32>
    %20 = tpu.matmul %19, %11, %cst_8 {dimension_numbers = #tpu.dot_dimension_numbers<[2], [1], [1], [2], [0, 0, 0, 1, 1, 2], [0], [0]>} : vector<1x8x8xf32>, vector<1x8x128xf32>, vector<1x8x128xf32> -> vector<1x8x128xf32>
    %21 = vector.shape_cast %20 : vector<1x8x128xf32> to vector<8x128xf32>
    %c0_9 = arith.constant 0 : index
    %c0_10 = arith.constant 0 : index
    %22 = vector.load %arg4[%c0_9, %c0_10] : memref<128x128xf32, #tpu.memory_space<vmem>>, vector<128x128xf32>
    %cst_11 = arith.constant dense<0.000000e+00> : vector<8x128xf32>
    %23 = tpu.matmul %21, %22, %cst_11 {dimension_numbers = #tpu.dot_dimension_numbers<[1], [0], [0], [1], [0, 0, 1, 1], [], []>} : vector<8x128xf32>, vector<128x128xf32>, vector<8x128xf32> -> vector<8x128xf32>
    %c0_12 = arith.constant 0 : index
    %c0_13 = arith.constant 0 : index
    %24 = vector.load %arg5[%c0_12, %c0_13] : memref<1x128xf32, #tpu.memory_space<vmem>>, vector<1x128xf32>
    %25 = vector.broadcast %24 : vector<1x128xf32> to vector<8x128xf32>
    %26 = arith.addf %23, %25 : vector<8x128xf32>
    %c0_14 = arith.constant 0 : index
    %c0_15 = arith.constant 0 : index
    %27 = vector.load %arg6[%c0_14, %c0_15] : memref<8x128xf32, #tpu.memory_space<vmem>>, vector<8x128xf32>
    tpu.vector_store %arg6[%c0_14, %c0_15], %26 {strides = array<i32>} : memref<8x128xf32, #tpu.memory_space<vmem>>, vector<8x128xf32>,
    return
  }
  func.func @transform_0(%arg0: i32) -> (i32, i32) {
    %c0_i32 = arith.constant 0 : i32
    %c0_i32_0 = arith.constant 0 : i32
    return %arg0, %c0_i32 : i32, i32
  }
  func.func @transform_1(%arg0: i32) -> (i32, i32) {
    %c0_i32 = arith.constant 0 : i32
    %c0_i32_0 = arith.constant 0 : i32
    %c0_i32_1 = arith.constant 0 : i32
    return %c0_i32, %c0_i32_0 : i32, i32
  }
  func.func @transform_2(%arg0: i32) -> (i32, i32) {
    %c0_i32 = arith.constant 0 : i32
    %c0_i32_0 = arith.constant 0 : i32
    %c0_i32_1 = arith.constant 0 : i32
    return %c0_i32, %c0_i32_0 : i32, i32
  }
  func.func @transform_3(%arg0: i32) -> (i32, i32) {
    %c0_i32 = arith.constant 0 : i32
    %c0_i32_0 = arith.constant 0 : i32
    %c0_i32_1 = arith.constant 0 : i32
    return %c0_i32, %c0_i32_0 : i32, i32
  }
  func.func @transform_4(%arg0: i32) -> (i32, i32) {
    %c0_i32 = arith.constant 0 : i32
    %c0_i32_0 = arith.constant 0 : i32
    %c0_i32_1 = arith.constant 0 : i32
    return %c0_i32, %c0_i32_0 : i32, i32
  }
  func.func @transform_5(%arg0: i32) -> (i32, i32) {
    %c0_i32 = arith.constant 0 : i32
    %c0_i32_0 = arith.constant 0 : i32
    return %arg0, %c0_i32 : i32, i32
  }
}

module attributes {stable_mosaic.version = 11 : i64} {
  func.func @_intra_modal_kernel(%arg0: i32, %arg1: memref<8x128xf32, #tpu.memory_space<vmem>>, %arg2: memref<128x384xf32, #tpu.memory_space<vmem>>, %arg3: memref<1x384xf32, #tpu.memory_space<vmem>>, %arg4: memref<128x128xf32, #tpu.memory_space<vmem>>, %arg5: memref<1x128xf32, #tpu.memory_space<vmem>>, %arg6: memref<8x128xf32, #tpu.memory_space<vmem>>) attributes {dimension_semantics = [#tpu.dimension_semantics<parallel>], iteration_bounds = array<i64: 2>, scalar_prefetch = 0 : i64, scratch_operands = 0 : i64, tpu.core_type = #tpu.core_type<tc>, window_params = [{transform_indices = @transform_0, window_bounds = array<i64: 8, 128>}, {pipeline_mode = #tpu.pipeline_mode<synchronous>, transform_indices = @transform_1, window_bounds = array<i64: 128, 384>}, {pipeline_mode = #tpu.pipeline_mode<synchronous>, transform_indices = @transform_2, window_bounds = array<i64: 1, 384>}, {pipeline_mode = #tpu.pipeline_mode<synchronous>, transform_indices = @transform_3, window_bounds = array<i64: 128, 128>}, {pipeline_mode = #tpu.pipeline_mode<synchronous>, transform_indices = @transform_4, window_bounds = array<i64: 1, 128>}, {transform_indices = @transform_5, window_bounds = array<i64: 8, 128>}]} {
    %c0 = arith.constant 0 : index
    %c0_0 = arith.constant 0 : index
    %0 = vector.load %arg1[%c0, %c0_0] : memref<8x128xf32, #tpu.memory_space<vmem>>, vector<8x128xf32>
    %c0_1 = arith.constant 0 : index
    %c0_2 = arith.constant 0 : index
    %1 = vector.load %arg2[%c0_1, %c0_2] : memref<128x384xf32, #tpu.memory_space<vmem>>, vector<128x384xf32>
    %cst = arith.constant dense<0.000000e+00> : vector<8x384xf32>
    %2 = tpu.matmul %0, %1, %cst {dimension_numbers = #tpu.dot_dimension_numbers<[1], [0], [0], [1], [0, 0, 1, 1], [], []>} : vector<8x128xf32>, vector<128x384xf32>, vector<8x384xf32> -> vector<8x384xf32>
    %c0_3 = arith.constant 0 : index
    %c0_4 = arith.constant 0 : index
    %3 = vector.load %arg3[%c0_3, %c0_4] : memref<1x384xf32, #tpu.memory_space<vmem>>, vector<1x384xf32>
    %4 = vector.broadcast %3 : vector<1x384xf32> to vector<8x384xf32>
    %5 = arith.addf %2, %4 : vector<8x384xf32>
    %6 = vector.extract_strided_slice %5 {offsets = [0, 0], sizes = [8, 128], strides = [1, 1]} : vector<8x384xf32> to vector<8x128xf32>
    %7 = vector.shape_cast %6 : vector<8x128xf32> to vector<1x8x128xf32>
    %8 = vector.extract_strided_slice %5 {offsets = [0, 128], sizes = [8, 128], strides = [1, 1]} : vector<8x384xf32> to vector<8x128xf32>
    %9 = vector.shape_cast %8 : vector<8x128xf32> to vector<1x8x128xf32>
    %10 = vector.extract_strided_slice %5 {offsets = [0, 256], sizes = [8, 128], strides = [1, 1]} : vector<8x384xf32> to vector<8x128xf32>
    %11 = vector.shape_cast %10 : vector<8x128xf32> to vector<1x8x128xf32>
    %cst_5 = arith.constant dense<0.000000e+00> : vector<1x8x8xf32>
    %12 = tpu.matmul %7, %9, %cst_5 {dimension_numbers = #tpu.dot_dimension_numbers<[2], [2], [1], [1], [0, 0, 0, 1, 1, 1], [0], [0]>} : vector<1x8x128xf32>, vector<1x8x128xf32>, vector<1x8x8xf32> -> vector<1x8x8xf32>
    %cst_6 = arith.constant 0.176776692 : f32
    %13 = vector.broadcast %cst_6 : f32 to vector<1x8x8xf32>
    %14 = arith.mulf %12, %13 : vector<1x8x8xf32>
    %15 = arith.negf %14 : vector<1x8x8xf32>
    %16 = math.exp %15 : vector<1x8x8xf32>
    %cst_7 = arith.constant 1.000000e+00 : f32
    %17 = vector.broadcast %cst_7 : f32 to vector<1x8x8xf32>
    %18 = arith.addf %17, %16 : vector<1x8x8xf32>
    %19 = arith.divf %17, %18 : vector<1x8x8xf32>
    %cst_8 = arith.constant dense<0.000000e+00> : vector<1x8x128xf32>
    %20 = tpu.matmul %19, %11, %cst_8 {dimension_numbers = #tpu.dot_dimension_numbers<[2], [1], [1], [2], [0, 0, 0, 1, 1, 2], [0], [0]>} : vector<1x8x8xf32>, vector<1x8x128xf32>, vector<1x8x128xf32> -> vector<1x8x128xf32>
    %21 = vector.shape_cast %20 : vector<1x8x128xf32> to vector<8x128xf32>
    %c0_9 = arith.constant 0 : index
    %c0_10 = arith.constant 0 : index
    %22 = vector.load %arg4[%c0_9, %c0_10] : memref<128x128xf32, #tpu.memory_space<vmem>>, vector<128x128xf32>
    %cst_11 = arith.constant dense<0.000000e+00> : vector<8x128xf32>
    %23 = tpu.matmul %21, %22, %cst_11 {dimension_numbers = #tpu.dot_dimension_numbers<[1], [0], [0], [1], [0, 0, 1, 1], [], []>} : vector<8x128xf32>, vector<128x128xf32>, vector<8x128xf32> -> vector<8x128xf32>
    %c0_12 = arith.constant 0 : index
    %c0_13 = arith.constant 0 : index
    %24 = vector.load %arg5[%c0_12, %c0_13] : memref<1x128xf32, #tpu.memory_space<vmem>>, vector<1x128xf32>
    %25 = vector.broadcast %24 : vector<1x128xf32> to vector<8x128xf32>
    %26 = arith.addf %23, %25 : vector<8x128xf32>
    %c0_14 = arith.constant 0 : index
    %c0_15 = arith.constant 0 : index
    %27 = vector.load %arg6[%c0_14, %c0_15] : memref<8x128xf32, #tpu.memory_space<vmem>>, vector<8x128xf32>
    tpu.vector_store %arg6[%c0_14, %c0_15], %26 {strides = array<i32>} : memref<8x128xf32, #tpu.memory_space<vmem>>, vector<8x128xf32>,
    return
  }
  func.func @transform_0(%arg0: i32) -> (i32, i32) {
    %c0_i32 = arith.constant 0 : i32
    %c0_i32_0 = arith.constant 0 : i32
    return %arg0, %c0_i32 : i32, i32
  }
  func.func @transform_1(%arg0: i32) -> (i32, i32) {
    %c0_i32 = arith.constant 0 : i32
    %c0_i32_0 = arith.constant 0 : i32
    %c0_i32_1 = arith.constant 0 : i32
    return %c0_i32, %c0_i32_0 : i32, i32
  }
  func.func @transform_2(%arg0: i32) -> (i32, i32) {
    %c0_i32 = arith.constant 0 : i32
    %c0_i32_0 = arith.constant 0 : i32
    %c0_i32_1 = arith.constant 0 : i32
    return %c0_i32, %c0_i32_0 : i32, i32
  }
  func.func @transform_3(%arg0: i32) -> (i32, i32) {
    %c0_i32 = arith.constant 0 : i32
    %c0_i32_0 = arith.constant 0 : i32
    %c0_i32_1 = arith.constant 0 : i32
    return %c0_i32, %c0_i32_0 : i32, i32
  }
  func.func @transform_4(%arg0: i32) -> (i32, i32) {
    %c0_i32 = arith.constant 0 : i32
    %c0_i32_0 = arith.constant 0 : i32
    %c0_i32_1 = arith.constant 0 : i32
    return %c0_i32, %c0_i32_0 : i32, i32
  }
  func.func @transform_5(%arg0: i32) -> (i32, i32) {
    %c0_i32 = arith.constant 0 : i32
    %c0_i32_0 = arith.constant 0 : i32
    return %arg0, %c0_i32 : i32, i32
  }
}

</mosaic_0001>

<bundles_post_ra>
// kernel: tpu_custom_call.1
= control target key start
LH: loop header
LB: loop body
LE: loop exit
PB: predicated region body
PF: predicated region fallthrough
CT: control target
= control target key end

     0   :  { %10 = vsyncpa [#allocation3], 0  ;;  %s1587_s0 = inlined_call_operand.hbm [shape: f32[16,128], index: 0, kind: input, shape index: {}]   ;;  %s1588_s1 = inlined_call_operand.hbm [shape: f32[128,384], index: 1, kind: input, shape index: {}]   ;;  %s1589_s2 = inlined_call_operand.vmem [shape: f32[1,384], index: 2, kind: input, shape index: {}]   ;;  %s1590_s3 = inlined_call_operand.hbm [shape: f32[128,128], index: 3, kind: input, shape index: {}]   ;;  %s1591_s4 = inlined_call_operand.vmem [shape: f32[1,128], index: 4, kind: input, shape index: {}]   ;;  %s1592_s5 = inlined_call_operand.hbm [shape: f32[16,128], index: 5, kind: output, shape index: {}]  }
   0x1   :  { %12 = vsyncpa [#allocation3 + $0x1], 0 }
   0x2   :  { %13 = vsyncpa [#allocation6], 0 }
   0x3   :  { %14 = vsyncpa [#allocation4], 0 }
   0x4   :  { %16 = vsyncpa [#allocation4 + $0x1], 0  ;;  %s1318_s18 = smov 0   ;;  %s1320_s19 = smov 0  }
   0x5   :  { %s1322_s20 = smov 0   ;;  %s1324_s21 = smov 0  }
   0x6 LB: > { %s1339_s22 = sadd.s32 4294967295, %s1275_s21   ;;  %s824_s23 = sadd.s32 4294967294, %s1275_s21   ;;  %s1275_s21 = sphi %s1324_s21, %s1612_s21   ;;  %s1271_s20 = sphi %s1322_s20, %s1611_s20   ;;  %s1267_s19 = sphi %s1320_s19, %s1610_s19   ;;  %s1263_s18 = sphi %s1318_s18, %s1609_s18  }
   0x7   : > { %p42_p0 = scmp.ne.s32.totalorder %s1267_s19, %s1263_s18  ;;  %p1593_p1 = scmp.eq.s32.totalorder %s1339_s22, 0 }
   0x8   : > { %p156_p3 = scmp.eq.s32.totalorder %s824_s23, 1  ;;  %p825_p5 = scmp.ge.s32.totalorder %s1275_s21, 1 }
   0x9   : > { %p1348_p4 = por %p1593_p1, %p42_p0  ;;  %p163_p7 = scmp.lt.s32.totalorder %s1275_s21, 3 }
   0xa   : > { %p1353_p6 = por %p156_p3, %p42_p0  ;;  %s1277_s27 = smov [#allocation5]  }
   0xb   : > { %s1596_s24 = scalar_select %p1348_p4, 1, 0 }
   0xc   : > { %s1597_s25 = scalar_select %p1353_p6, 1, 0 }
   0xd   : > { %p1358_p8 = pnand %p825_p5, %p163_p7  ;;  %s175_s28 = sshll.u32 %s1277_s27, 4  ;;  %s1362_s28 = int_to_ptr.vmem [resolvable:$true] %s175_s28 }
   0xe   : > { %s1278_s30 = smov [#allocation7]   ;;  %s1119_s9 = scalar_lea.hbm %s1588_s1, 6144 }
   0xf   : > { %p1053_p9 = pneg %p1358_p8  ;;  %s191_s6 = sshll.u32 %s1278_s30, 4  ;;  %s1373_s6 = int_to_ptr.vmem [resolvable:$true] %s191_s6 }
  0x10   : > { %p1120_p12 = scmp.ne.s32.totalorder %s1588_s1, %s1119_s9  ;;  %p1126_p5 = scmp.lt.u32.totalorder %s1119_s9, %s1588_s1 }
  0x11   : > { %p1369_p11 = pnand %p1053_p9, %p1593_p1 }
  0x13   : > { %p1121_p13 = pneg %p1369_p11 }
  0x15   : > { %p1122_p0 = pnand %p1121_p13, %p1120_p12 }
  0x17   : > { %p1123_p3 = pneg %p1122_p0 }
  0x19   : > { %p1128_p7 = pnand %p1126_p5, %p1123_p3 }
  0x1b   : > { %1131 = shalt.err (!%p1128_p7)
}
  0x1c   : > { %s1132_s14 = scalar_lea.vmem %s1362_s28, 6144  ;;  %p1140_p2 = scmp.lt.s32.totalorder %s1362_s28, %s1362_s28 }
  0x1d   : > { %p1133_p9 = scmp.ne.s32.totalorder %s1362_s28, %s1132_s14  ;;  %p1141_p12 = scmp.lt.s32.totalorder %s1132_s14, %s1132_s14 }
  0x1f   : > { %p1135_p10 = pnand %p1133_p9, %p1121_p13  ;;  %p1142_p0 = por %p1141_p12, %p1140_p2 }
  0x21   : > { %p1136_p1 = pneg %p1135_p10 }
  0x23   : > { %p1143_p6 = pnand %p1142_p0, %p1136_p1 }
  0x25   : > { %1146 = shalt.err (!%p1143_p6)
}
  0x26   : > { %s1279_s15 = smov 384   ;;  %s1280_s16 = smov 24  }
  0x27   : > { %1056 = dma.hbm_to_vmem [thread:$0]  (!%p1369_p11), %s1588_s1, 6144, %s1362_s28, [#allocation6], %s1279_s15, %s1279_s15, %s1280_s16  }
  0x28   : > { %s1147_s7 = scalar_lea.hbm %s1590_s3, 2048 }
  0x29   : > { %p1148_p2 = scmp.ne.s32.totalorder %s1590_s3, %s1147_s7  ;;  %p1154_p10 = scmp.lt.u32.totalorder %s1147_s7, %s1590_s3 }
  0x2b   : > { %p1150_p1 = pnand %p1148_p2, %p1121_p13 }
  0x2d   : > { %p1151_p6 = pneg %p1150_p1 }
  0x2f   : > { %p1156_p3 = pnand %p1154_p10, %p1151_p6 }
  0x31   : > { %1159 = shalt.err (!%p1156_p3)
}
  0x32   : > { %s1160_s28 = scalar_lea.vmem %s1373_s6, 2048  ;;  %p1168_p12 = scmp.lt.s32.totalorder %s1373_s6, %s1373_s6 }
  0x33   : > { %p1161_p5 = scmp.ne.s32.totalorder %s1373_s6, %s1160_s28  ;;  %p1169_p0 = scmp.lt.s32.totalorder %s1160_s28, %s1160_s28 }
  0x35   : > { %p1163_p7 = pnand %p1161_p5, %p1121_p13  ;;  %p1170_p2 = por %p1169_p0, %p1168_p12 }
  0x37   : > { %p1164_p9 = pneg %p1163_p7 }
  0x39   : > { %p1171_p1 = pnand %p1170_p2, %p1164_p9 }
  0x3b   : > { %1174 = shalt.err (!%p1171_p1)
}
  0x3c   : > { %s1281_s12 = smov 128   ;;  %s1282_s13 = smov 8  }
  0x3d   : > { %1059 = dma.hbm_to_vmem [thread:$0]  (!%p1369_p11), %s1590_s3, 2048, %s1373_s6, [#allocation6], %s1281_s12, %s1281_s12, %s1282_s13  }
  0x3e   : > { %s1428_s16 = sadd.s32 1, %s1275_s21   ;;  %s29_s23 = sadd.s32 1, %s1271_s20 }
  0x3f   : > { %s26_s17 = ssub.s32 %s1275_s21, %s1428_s16  ;;  %p36_p6 = scmp.ne.s32.totalorder %s1271_s20, %s1267_s19 }
  0x40   : > { %p27_p13 = scmp.eq.s32.totalorder %s26_s17, 0  ;;  %p37_p10 = scmp.eq.s32.totalorder %s1275_s21, 0 }
  0x41   : > { %p1600_p5 = scmp.eq.s32.totalorder %s1339_s22, 1  ;;  %p1070_p9 = scmp.lt.s32.totalorder %s1275_s21, 2 }
  0x42   : > { %s1437_s27 = scalar_select %p27_p13, %s1271_s20, %s29_s23  }
  0x43   : > { %p38_p3 = por %p37_p10, %p36_p6  ;;  %p1441_p7 = por %p1600_p5, %p36_p6 }
  0x44   : > { %s208_s29 = sand.u32 1, %s1271_s20   ;;  %s830_s6 = sshll.u32 %s1275_s21, 7 }
  0x45   : > { %s1601_s30 = scalar_select %p1441_p7, 1, 0 }
  0x46   : > { %s829_s7 = sshll.u32 %s208_s29, 3  ;;  %s1451_s10 = scalar_lea.hbm %s1587_s0, %s830_s6 }
  0x47   : > { %s212_s11 = scalar_lea.vmem [#allocation2], %s829_s7  ;;  %p1455_p11 = pnand %p1070_p9, %p38_p3 }
  0x48   : > { %s219_s28 = sshll.u32 %s212_s11, 4  ;;  %s209_s13 = scalar_lea.sflag [#allocation3], %s208_s29  ;;  %s1453_s28 = int_to_ptr.vmem [resolvable:$true] %s219_s28 }
  0x49   : > { %s1175_s14 = scalar_lea.hbm %s1451_s10, 128  ;;  %p1177_p0 = pneg %p1455_p11 }
  0x4a   : > { %p1176_p12 = scmp.ne.s32.totalorder %s1451_s10, %s1175_s14  ;;  %s1180_s23 = scalar_lea.hbm %s1587_s0, 256 }
  0x4b   : > { %p1181_p13 = scmp.lt.u32.totalorder %s1451_s10, %s1587_s0  ;;  %p1182_p6 = scmp.lt.u32.totalorder %s1180_s23, %s1175_s14 }
  0x4c   : > { %p1178_p2 = pnand %p1177_p0, %p1176_p12  ;;  %p1184_p3 = scmp.lt.u32.totalorder %s1175_s14, %s1451_s10 }
  0x4d   : > { %p1183_p10 = por %p1182_p6, %p1181_p13 }
  0x4e   : > { %p1179_p1 = pneg %p1178_p2 }
  0x4f   : > { %p1185_p5 = por %p1184_p3, %p1183_p10 }
  0x51   : > { %p1186_p9 = pnand %p1185_p5, %p1179_p1 }
  0x53   : > { %1189 = shalt.err (!%p1186_p9)
}
  0x54   : > { %s1190_s29 = scalar_lea.vmem %s1453_s28, 128  ;;  %s1283_s8 = smov [#allocation2]  }
  0x55   : > { %p1191_p12 = scmp.ne.s32.totalorder %s1453_s28, %s1190_s29  ;;  %s1195_s9 = sshll.u32 %s1283_s8, 4  ;;  %s1196_s9 = int_to_ptr.vmem [resolvable:$false] %s1195_s9 }
  0x56   : > { %s1197_s11 = scalar_lea.vmem %s1196_s9, 256  ;;  %p1198_p4 = scmp.lt.s32.totalorder %s1453_s28, %s1196_s9 }
  0x57   : > { %p1193_p2 = pnand %p1191_p12, %p1177_p0  ;;  %p1199_p13 = scmp.lt.s32.totalorder %s1197_s11, %s1190_s29 }
  0x59   : > { %p1194_p7 = pneg %p1193_p2  ;;  %p1200_p6 = por %p1199_p13, %p1198_p4 }
  0x5b   : > { %p1201_p10 = pnand %p1200_p6, %p1194_p7 }
  0x5d   : > { %1204 = shalt.err (!%p1201_p10)
}
  0x5e   : > { %1063 = dma.hbm_to_vmem [thread:$0]  (!%p1455_p11), %s1451_s10, 128, %s1453_s28, %s209_s13  }
  0x5f   : > { %228 = sbr.rel (%p1358_p8) target bundleno = 1039 (0x40f), region = 40  ;;  %s1487_s14 = sand.u32 (!%p1358_p8), 1, %s1267_s19  }
  0x60   : > { %s832_s15 = sshll.u32 (!%p1358_p8), %s1487_s14, 3  ;;  %s231_s17 = scalar_lea.sflag (!%p1358_p8), [#allocation3], %s1487_s14 }
  0x61   : > { %s1493_s23 = scalar_lea.vmem (!%p1358_p8), [#allocation2], %s832_s15  ;;  %p1603_p4 = scmp.ne.s32.totalorder (!%p1358_p8), %s1596_s24, 0 }
  0x66   : > { %1250 = dma.done.wait (%p1603_p4), %s231_s17, 128  }
  0x67   : > { %1252 = vsyncadd (%p1603_p4), %s231_s17, 4294967168  ;;  %p1604_p7 = scmp.eq.s32.totalorder %s1339_s22, 0 }
  0x69   : > { %1254 = dma.done.wait (%p1604_p7), [#allocation6], 8192   ;;  %p1605_p8 = pmov %p1604_p7 }
  0x6a   : > { %v1284_v0 = vmov 0.0   ;;  %v1285_v1 = vmov 0.0|0.0   ;;  %v271_v2 = vld [vmem:[#allocation5 + $0x8] sm:$0xff]  ;;  %v274_v3 = vld [vmem:[#allocation5 + $0x20] sm:$0xff]  ;;  %v273_v6 = vld [vmem:[#allocation5 + $0x18] sm:$0xff]  ;;  %vm1286_vm0 = vmmov 0  }
  0x6b   : > { %1256 = vsyncadd (%p1605_p8), [#allocation6], 4294959104  ;;  %399 = vmatprep.mubr.f32.mxu0 %v1284_v0  ;;  %993 = vmatprep.subr.bf16.mxu1 %v1285_v1  ;;  %v270_v4 = vld [vmem:[#allocation5] sm:$0xff]  ;;  %v961_v5 = vpack.c.bf16 %v274_v3, %v271_v2  ;;  %v277_v7 = vld [vmem:[#allocation5 + $0x38] sm:$0xff]  ;;  %vm553_vm1 = vcmask 64512   ;;  %s840_s12 = sshll.u32 %s1339_s22, 7 }
  0x6c   : > { %v280_v8 = vld [vmem:[#allocation5 + $0x50] sm:$0xff]  ;;  %v963_v9 = vpack.c.bf16 %v273_v6, %v270_v4  ;;  %v279_v12 = vld [vmem:[#allocation5 + $0x48] sm:$0xff]  ;;  %v286_v14 = vld [vmem:[#allocation5 + $0x80] sm:$0xff]  ;;  %913 = vmatprep.mubr.msk.f32.mxu1 %vm1286_vm0, %v1284_v0  ;;  %s268_s13 = scalar_lea.vmem [#allocation8], %s832_s15  ;;  %s1543_s8 = scalar_lea.hbm %s1592_s5, %s840_s12 }
  0x6d   : > { %v965_v10 = vpack.c.bf16 %v280_v8, %v277_v7  ;;  %v276_v11 = vld [vmem:[#allocation5 + $0x30] sm:$0xff]  ;;  %v283_v13 = vld [vmem:[#allocation5 + $0x68] sm:$0xff]  ;;  %962 = vmatprep.subr.bf16.mxu0 %v961_v5  ;;  %v282_v17 = vld [vmem:[#allocation5 + $0x60] sm:$0xff]  ;;  %s735_s7 = sshll.u32 %s268_s13, 4  ;;  %s722_s9 = scalar_lea.sflag [#allocation4], %s1487_s14  ;;  %s1545_s7 = int_to_ptr.vmem [resolvable:$true] %s735_s7 }
  0x6e   : > { %964 = vmatpush1.bf16.msra.mxu0 %v963_v9  ;;  %v967_v15 = vpack.c.bf16 %v279_v12, %v276_v11  ;;  %v969_v16 = vpack.c.bf16 %v286_v14, %v283_v13  ;;  %v285_v18 = vld [vmem:[#allocation5 + $0x78] sm:$0xff]  ;;  %v292_v20 = vld [vmem:[#allocation5 + $0xb0] sm:$0xff]  ;;  %v291_v24 = vld [vmem:[#allocation5 + $0xa8] sm:$0xff]  ;;  %v320_v13 = vlaneseq  ;;  %s1205_s11 = scalar_lea.vmem %s1545_s7, 128  ;;  %p1606_p0 = scmp.ne.s32.totalorder %s1601_s30, 0 }
  0x6f   : > { %966 = vmatprep.subr.bf16.mxu0 %v965_v10  ;;  %v289_v19 = vld [vmem:[#allocation5 + $0x98] sm:$0xff]  ;;  %v971_v21 = vpack.c.bf16 %v285_v18, %v282_v17  ;;  %v288_v23 = vld [vmem:[#allocation5 + $0x90] sm:$0xff]  ;;  %v295_v25 = vld [vmem:[#allocation5 + $0xc8] sm:$0xff]  ;;  %p1206_p11 = scmp.ne.s32.totalorder %s1545_s7, %s1205_s11  ;;  %s1287_s22 = smov [#allocation8]  }
  0x70   : > { %v973_v22 = vpack.c.bf16 %v292_v20, %v289_v19  ;;  %v298_v26 = vld [vmem:[#allocation5 + $0xe0] sm:$0xff]  ;;  %v272_v27 = vld [vmem:[#allocation5 + $0x10] sm:$0xff]  ;;  %v275_v28 = vld [vmem:[#allocation5 + $0x28] sm:$0xff]  ;;  %v975_v30 = vpack.c.bf16 %v291_v24, %v288_v23  ;;  %v321_v14 = vshrl.u32 %v320_v13, 7  ;;  %s1209_s15 = sshll.u32 %s1287_s22, 4  ;;  %s1210_s15 = int_to_ptr.vmem [resolvable:$false] %s1209_s15 }
  0x71   : > { %v278_v29 = vld [vmem:[#allocation5 + $0x40] sm:$0xff]  ;;  %v994_v31 = vpack.c.bf16 %v275_v28, %v272_v27  ;;  %v281_v32 = vld [vmem:[#allocation5 + $0x58] sm:$0xff]  ;;  %v977_v33 = vpack.c.bf16 %v298_v26, %v295_v25  ;;  %v304_v37 = vld [vmem:[#allocation5 + $0x110] sm:$0xff]  ;;  %p1207_p1 = pnand %p1206_p11, %p1606_p0  ;;  %s1211_s17 = scalar_lea.vmem %s1210_s15, 256 }
  0x72   : > { %968 = vmatpush1.bf16.msra.mxu0 %v967_v15  ;;  %v294_v34 = vld [vmem:[#allocation5 + $0xc0] sm:$0xff]  ;;  %v297_v35 = vld [vmem:[#allocation5 + $0xd8] sm:$0xff]  ;;  %v997_v38 = vpack.c.bf16 %v281_v32, %v278_v29  ;;  %v284_v39 = vld [vmem:[#allocation5 + $0x70] sm:$0xff]  ;;  %v326_v15 = vsub.s32 1, %v321_v14  ;;  %v322_v17 = vsub.s32 0, %v321_v14  ;;  %v330_v24 = vsub.s32 2, %v321_v14  ;;  %p1212_p5 = scmp.lt.s32.totalorder %s1545_s7, %s1210_s15  ;;  %p1213_p9 = scmp.lt.s32.totalorder %s1211_s17, %s1205_s11 }
  0x73   : > { %970 = vmatprep.subr.bf16.mxu0 %v969_v16  ;;  %v301_v36 = vld [vmem:[#allocation5 + $0xf8] sm:$0xff]  ;;  %995 = vmatpush3.bf16.msra.mxu1 %v994_v31  ;;  %v287_v40 = vld [vmem:[#allocation5 + $0x88] sm:$0xff]  ;;  %v979_v41 = vpack.c.bf16 %v297_v35, %v294_v34  ;;  %v300_v43 = vld [vmem:[#allocation5 + $0xf0] sm:$0xff]  ;;  %p1208_p3 = pneg %p1207_p1 }
  0x74   : > { %996 = vmatprep.subr.bf16.mxu1 %v1285_v1  ;;  %v981_v42 = vpack.c.bf16 %v304_v37, %v301_v36  ;;  %v303_v44 = vld [vmem:[#allocation5 + $0x108] sm:$0xff]  ;;  %v310_v46 = vld [vmem:[#allocation5 + $0x140] sm:$0xff]  ;;  %v1000_v47 = vpack.c.bf16 %v287_v40, %v284_v39  ;;  %v293_v49 = vld [vmem:[#allocation5 + $0xb8] sm:$0xff]  ;;  %p1214_p12 = por %p1213_p9, %p1212_p5 }
  0x75   : > { %v307_v45 = vld [vmem:[#allocation5 + $0x128] sm:$0xff]  ;;  %v290_v48 = vld [vmem:[#allocation5 + $0xa0] sm:$0xff]  ;;  %v983_v50 = vpack.c.bf16 %v303_v44, %v300_v43  ;;  %v309_v53 = vld [vmem:[#allocation5 + $0x138] sm:$0xff] }
  0x76   : > { %972 = vmatpush1.bf16.msra.mxu0 %v971_v21  ;;  %v985_v51 = vpack.c.bf16 %v310_v46, %v307_v45  ;;  %v306_v52 = vld [vmem:[#allocation5 + $0x120] sm:$0xff]  ;;  %v313_v54 = vld [vmem:[#allocation5 + $0x158] sm:$0xff]  ;;  %v316_v55 = vld [vmem:[#allocation5 + $0x170] sm:$0xff]  ;;  %v1003_v56 = vpack.c.bf16 %v293_v49, %v290_v48  ;;  %p1215_p2 = pnand %p1214_p12, %p1208_p3 }
  0x77   : > { %974 = vmatprep.subr.bf16.mxu0 %v973_v22  ;;  %998 = vmatpush3.bf16.msra.mxu1 %v997_v38  ;;  %v296_v57 = vld [vmem:[#allocation5 + $0xd0] sm:$0xff]  ;;  %v299_v58 = vld [vmem:[#allocation5 + $0xe8] sm:$0xff]  ;;  %v987_v59 = vpack.c.bf16 %v309_v53, %v306_v52  ;;  %v989_v60 = vpack.c.bf16 %v316_v55, %v313_v54  ;;  %v302_v2 = vld [vmem:[#allocation5 + $0x100] sm:$0xff] }
  0x78   : > { %999 = vmatprep.subr.bf16.mxu1 %v1285_v1  ;;  %v312_v61 = vld [vmem:[#allocation5 + $0x150] sm:$0xff]  ;;  %v315_v62 = vld [vmem:[#allocation5 + $0x168] sm:$0xff]  ;;  %v1006_v63 = vpack.c.bf16 %v299_v58, %v296_v57  ;;  %v305_v3 = vld [vmem:[#allocation5 + $0x118] sm:$0xff] }
  0x79   : > { %v991_v4 = vpack.c.bf16 %v315_v62, %v312_v61  ;;  %v1009_v5 = vpack.c.bf16 %v305_v3, %v302_v2  ;;  %v308_v6 = vld [vmem:[#allocation5 + $0x130] sm:$0xff]  ;;  %v311_v7 = vld [vmem:[#allocation5 + $0x148] sm:$0xff]  ;;  %v314_v10 = vld [vmem:[#allocation5 + $0x160] sm:$0xff] }
  0x7a   : > { %976 = vmatpush1.bf16.msra.mxu0 %v975_v30  ;;  %v269_v8 = vld [vmem:[%s1493_s23] sm:$0xff]  ;;  %v1012_v9 = vpack.c.bf16 %v311_v7, %v308_v6  ;;  %v627_v29 = vld [vmem:[#allocation7] sm:$0xff]  ;;  %v628_v30 = vld [vmem:[#allocation7 + $0x8] sm:$0xff] }
  0x7b   : > { %978 = vmatprep.subr.bf16.mxu0 %v977_v33  ;;  %1001 = vmatpush3.bf16.msra.mxu1 %v1000_v47  ;;  %v317_v11 = vld [vmem:[#allocation5 + $0x178] sm:$0xff]  ;;  %v318_v16 = vld [vmem:[%s1589_s2] sm:$0x7]  ;;  %v1018_v32 = vpack.c.bf16 %v628_v30, %v627_v29  ;;  %v631_v35 = vld [vmem:[#allocation7 + $0x20] sm:$0xff] }
  0x7c   : > { %1002 = vmatprep.subr.bf16.mxu1 %v1285_v1  ;;  %v1015_v12 = vpack.c.bf16 %v317_v11, %v314_v10  ;;  %v327_v18 = vrot.slane %v318_v16, %v326_v15  ;;  %v323_v20 = vrot.slane %v318_v16, %v322_v17  ;;  %v331_v25 = vrot.slane %v318_v16, %v330_v24  ;;  %v629_v31 = vld [vmem:[#allocation7 + $0x10] sm:$0xff]  ;;  %v630_v33 = vld [vmem:[#allocation7 + $0x18] sm:$0xff]  ;;  %v632_v36 = vld [vmem:[#allocation7 + $0x28] sm:$0xff] }
  0x7d   : > { %v1021_v34 = vpack.c.bf16 %v630_v33, %v629_v31  ;;  %v1024_v37 = vpack.c.bf16 %v632_v36, %v631_v35  ;;  %v634_v38 = vld [vmem:[#allocation7 + $0x38] sm:$0xff]  ;;  %v635_v40 = vld [vmem:[#allocation7 + $0x40] sm:$0xff]  ;;  %v637_v43 = vld [vmem:[#allocation7 + $0x50] sm:$0xff] }
  0x7e   : > { %980 = vmatpush1.bf16.msra.mxu0 %v979_v41  ;;  %v636_v41 = vld [vmem:[#allocation7 + $0x48] sm:$0xff]  ;;  %v638_v44 = vld [vmem:[#allocation7 + $0x58] sm:$0xff]  ;;  %v639_v46 = vld [vmem:[#allocation7 + $0x60] sm:$0xff] }
  0x7f   : > { %982 = vmatprep.subr.bf16.mxu0 %v981_v42  ;;  %1004 = vmatpush3.bf16.msra.mxu1 %v1003_v56  ;;  %v1030_v42 = vpack.c.bf16 %v636_v41, %v635_v40  ;;  %v1033_v45 = vpack.c.bf16 %v638_v44, %v637_v43  ;;  %v640_v47 = vld [vmem:[#allocation7 + $0x68] sm:$0xff]  ;;  %v641_v49 = vld [vmem:[#allocation7 + $0x70] sm:$0xff] }
  0x80   : > { %1005 = vmatprep.subr.bf16.mxu1 %v1285_v1  ;;  %v1036_v48 = vpack.c.bf16 %v640_v47, %v639_v46 }
  0x82   : > { %984 = vmatpush1.bf16.msra.mxu0 %v983_v50  ;;  %v642_v50 = vld [vmem:[#allocation7 + $0x78] sm:$0xff] }
  0x83   : > { %986 = vmatprep.subr.bf16.mxu0 %v985_v51  ;;  %1007 = vmatpush3.bf16.msra.mxu1 %v1006_v63  ;;  %v1039_v51 = vpack.c.bf16 %v642_v50, %v641_v49 }
  0x84   : > { %1008 = vmatprep.subr.bf16.mxu1 %v1285_v1 }
  0x86   : > { %988 = vmatpush1.bf16.msra.mxu0 %v987_v59 }
  0x87   : > { %990 = vmatprep.subr.bf16.mxu0 %v989_v60  ;;  %1010 = vmatpush3.bf16.msra.mxu1 %v1009_v5 }
  0x88   : > { %1011 = vmatprep.subr.bf16.mxu1 %v1285_v1 }
  0x8a   : > { %992 = vmatpush1.bf16.msra.mxu0 %v991_v4 }
  0x8b   : > { %1017 = vmatprep.subr.bf16.mxu0 %v1285_v1  ;;  %1013 = vmatpush3.bf16.msra.mxu1 %v1012_v9 }
  0x8c   : > { %1014 = vmatprep.subr.bf16.mxu1 %v1285_v1 }
  0x8d   : > { %400 = vmatmul.mubr.f32.vlgmr.msra.gmra.mrb[0].mxu0 %v269_v8 }
  0x8e   : > { %958 = vmatprep.mubr.msk.f32.mxu0 %vm1286_vm0, %v1284_v0  ;;  %1019 = vmatpush3.bf16.msra.mxu0 %v1018_v32 }
  0x8f   : > { %1016 = vmatpush3.bf16.msra.mxu1 %v1015_v12  ;;  %1020 = vmatprep.subr.bf16.mxu0 %v1285_v1 }
  0x90   : > { %916 = vmatprep.subr.mxu1 %v1284_v0 }
  0x92   : > { %914 = vmatmul.mubr.f32.vlgmr.msra.gmra.mrb[0].mxu1 %v269_v8  ;;  %1022 = vmatpush3.bf16.msra.mxu0 %v1021_v34 }
  0x93   : > { %918 = vmatprep.mubr.msk.f32.mxu1 %vm1286_vm0, %v1284_v0  ;;  %1023 = vmatprep.subr.bf16.mxu0 %v1285_v1 }
  0x96   : > { %1025 = vmatpush3.bf16.msra.mxu0 %v1024_v37 }
  0x97   : > { %1026 = vmatprep.subr.bf16.mxu0 %v1285_v1 }
 0x160   : > { %v401_v19 = vpop.f32.mrb[0].mxu0 }
 0x161   : > { %v403_v21 = vpop.f32.mrb[1].mxu0  ;;  %v402_v23 = vadd.f32 %v401_v19, %v323_v20 }
 0x162   : > { %v404_v22 = vadd.f32 %v403_v21, %v327_v18 }
 0x164   : > { %917 = vmatpush3.xpose.msra.mxu1 %v404_v22 }
 0x165   : > { %921 = vmatprep.subr.mxu1 %v1284_v0  ;;  %v472_v26 = vpop.f32.mrb[0].mxu1 }
 0x166   : > { %v473_v27 = vadd.f32 %v472_v26, %v331_v25  ;;  %v915_v28 = vpop.f32.mrb[1].mxu1 }
 0x167   : > { %919 = vmatmul.mubr.f32.vlgmr.msra.gmra.mrb[2].mxu1 %v402_v23 }
 0x168   : > { %923 = vmatprep.mubr.msk.f32.mxu1 %vm1286_vm0, %v1284_v0  ;;  %922 = vmatpush3.msra.mxu1 %v473_v27  ;;  %v633_v0 = vld [vmem:[#allocation7 + $0x30] sm:$0xff] }
 0x169   : > { %v1027_v39 = vpack.c.bf16 %v634_v38, %v633_v0 }
 0x16b   : > { %1028 = vmatpush3.bf16.msra.mxu0 %v1027_v39 }
 0x16c   : > { %1029 = vmatprep.subr.bf16.mxu0 %v1285_v1 }
 0x16f   : > { %1031 = vmatpush3.bf16.msra.mxu0 %v1030_v42 }
 0x170   : > { %1032 = vmatprep.subr.bf16.mxu0 %v1285_v1 }
 0x173   : > { %1034 = vmatpush3.bf16.msra.mxu0 %v1033_v45 }
 0x174   : > { %1035 = vmatprep.subr.bf16.mxu0 %v1285_v1 }
 0x177   : > { %1037 = vmatpush3.bf16.msra.mxu0 %v1036_v48 }
 0x178   : > { %1038 = vmatprep.subr.bf16.mxu0 %v1285_v1  ;;  %v838_v1 = vld [vmem:[%s1591_s4] ss:$0 sm:$0xff] }
 0x17b   : > { %1040 = vmatpush3.bf16.msra.mxu0 %v1039_v51 }
 0x23a   : > { %v542_v52 = vpop.f32.mrb[2].mxu1 }
 0x23b   : > { %v836_v53 = vmul.f32 -0.17677669, %v542_v52  ;;  %v920_v54 = vpop.f32.mrb[3].mxu1 }
 0x23d   : > { %v548_v55 = vmul.f32 1.442695, %v836_v53 }
 0x23f   : > { %1115 = vpow2.f32 %v548_v55 }
 0x249   : > { %v1116_v56 = vpop.eup %1115 }
 0x24a   : > { %v550_v57 = vadd.f32 1.0, %v1116_v56 }
 0x24c   : > { %1117 = vrcp.f32 %v550_v57 }
 0x256   : > { %v1118_v58 = vpop.eup %1117 }
 0x257   : > { %924 = vmatmul.mubr.msk.f32.vlgmr.msra.gmra.mrb[4].mxu1 %vm553_vm1, %v1118_v58 }
 0x32a   : > { %v623_v59 = vpop.f32.mrb[4].mxu1 }
 0x32b   : > { %v925_v60 = vpop.f32.mrb[5].mxu1  ;;  %959 = vmatmul.mubr.f32.vlgmr.msra.gmra.mrb[2].mxu0 %v623_v59 }
 0x3fe   : > { %v716_v61 = vpop.f32.mrb[2].mxu0 }
 0x3ff   : > { %v717_v62 = vadd.f32 %v838_v1, %v716_v61  ;;  %v960_v63 = vpop.f32.mrb[3].mxu0 }
 0x401   : > { %720 = vst [vmem:[%s268_s13] sm:$0xff] %v717_v62 }
 0x402   : > { %1218 = shalt.err (!%p1215_p2)
}
 0x403   : > { %s1219_s14 = scalar_lea.hbm %s1543_s8, 128  ;;  %s1223_s26 = scalar_lea.hbm %s1592_s5, 256 }
 0x404   : > { %p1220_p13 = scmp.ne.s32.totalorder %s1543_s8, %s1219_s14  ;;  %p1224_p4 = scmp.lt.u32.totalorder %s1543_s8, %s1592_s5 }
 0x405   : > { %p1225_p7 = scmp.lt.u32.totalorder %s1223_s26, %s1219_s14  ;;  %p1227_p11 = scmp.lt.u32.totalorder %s1219_s14, %s1543_s8 }
 0x406   : > { %p1221_p6 = pnand %p1220_p13, %p1606_p0 }
 0x407   : > { %p1226_p8 = por %p1225_p7, %p1224_p4 }
 0x408   : > { %p1222_p10 = pneg %p1221_p6 }
 0x409   : > { %p1228_p1 = por %p1227_p11, %p1226_p8 }
 0x40b   : > { %p1229_p3 = pnand %p1228_p1, %p1222_p10 }
 0x40d   : > { %1232 = shalt.err (!%p1229_p3)
}
 0x40e   : > { %1051 = dma.vmem_to_hbm [thread:$0]  (%p1606_p0), %s1545_s7, 128, %s1543_s8, %s722_s9  }
 0x40f PF: > { %s747_s12 = sand.u32 1, %s1263_s18   ;;  %p1607_p5 = scmp.ne.s32.totalorder %s1597_s25, 0 }
 0x410   : > { %p1608_p9 = scmp.ge.s32.totalorder %s1275_s21, 2  ;;  %s748_s13 = scalar_lea.sflag [#allocation4], %s747_s12 }
 0x412   : > { %p1065_p12 = pnand %p1608_p9, %p1607_p5 }
 0x414   : > { %1258 = dma.done.wait (!%p1065_p12), %s748_s13, 128  }
 0x415   : > { %1260 = vsyncadd (!%p1065_p12), %s748_s13, 4294967168  ;;  %p19_p2 = scmp.ge.s32.totalorder %s1428_s16, 4   ;;  %s1609_s18 = smov %s1267_s19 }
 0x416   : > { %s1610_s19 = smov %s1271_s20  ;;  %s1611_s20 = smov %s1437_s27 }
 0x417   : > { %s1612_s21 = smov %s1428_s16  ;;  %21 = sbr.rel (!%p19_p2) target bundleno = 6 (0x6), region = 93 }
 0x41e   :  { %753 = vsyncpa [#allocation3], 1 }
 0x41f   :  { %755 = vsyncpa [#allocation3 + $0x1], 1 }
 0x420   :  { %756 = vsyncpa [#allocation6], 1 }
 0x421   :  { %757 = vsyncpa [#allocation4], 1 }
 0x422   :  { %759 = vsyncpa [#allocation4 + $0x1], 1 }

// kernel: tpu_custom_call.1
= control target key start
LH: loop header
LB: loop body
LE: loop exit
PB: predicated region body
PF: predicated region fallthrough
CT: control target
= control target key end

     0   :  { %10 = vsyncpa [#allocation3], 0  ;;  %s1587_s0 = inlined_call_operand.hbm [shape: f32[16,128], index: 0, kind: input, shape index: {}]   ;;  %s1588_s1 = inlined_call_operand.hbm [shape: f32[128,384], index: 1, kind: input, shape index: {}]   ;;  %s1589_s2 = inlined_call_operand.vmem [shape: f32[1,384], index: 2, kind: input, shape index: {}]   ;;  %s1590_s3 = inlined_call_operand.hbm [shape: f32[128,128], index: 3, kind: input, shape index: {}]   ;;  %s1591_s4 = inlined_call_operand.vmem [shape: f32[1,128], index: 4, kind: input, shape index: {}]   ;;  %s1592_s5 = inlined_call_operand.hbm [shape: f32[16,128], index: 5, kind: output, shape index: {}]  }
   0x1   :  { %12 = vsyncpa [#allocation3 + $0x1], 0 }
   0x2   :  { %13 = vsyncpa [#allocation6], 0 }
   0x3   :  { %14 = vsyncpa [#allocation4], 0 }
   0x4   :  { %16 = vsyncpa [#allocation4 + $0x1], 0  ;;  %s1318_s18 = smov 0   ;;  %s1320_s19 = smov 0  }
   0x5   :  { %s1322_s20 = smov 0   ;;  %s1324_s21 = smov 0  }
   0x6 LB: > { %s1339_s22 = sadd.s32 4294967295, %s1275_s21   ;;  %s824_s23 = sadd.s32 4294967294, %s1275_s21   ;;  %s1275_s21 = sphi %s1324_s21, %s1612_s21   ;;  %s1271_s20 = sphi %s1322_s20, %s1611_s20   ;;  %s1267_s19 = sphi %s1320_s19, %s1610_s19   ;;  %s1263_s18 = sphi %s1318_s18, %s1609_s18  }
   0x7   : > { %p42_p0 = scmp.ne.s32.totalorder %s1267_s19, %s1263_s18  ;;  %p1593_p1 = scmp.eq.s32.totalorder %s1339_s22, 0 }
   0x8   : > { %p156_p3 = scmp.eq.s32.totalorder %s824_s23, 1  ;;  %p825_p5 = scmp.ge.s32.totalorder %s1275_s21, 1 }
   0x9   : > { %p1348_p4 = por %p1593_p1, %p42_p0  ;;  %p163_p7 = scmp.lt.s32.totalorder %s1275_s21, 3 }
   0xa   : > { %p1353_p6 = por %p156_p3, %p42_p0  ;;  %s1277_s27 = smov [#allocation5]  }
   0xb   : > { %s1596_s24 = scalar_select %p1348_p4, 1, 0 }
   0xc   : > { %s1597_s25 = scalar_select %p1353_p6, 1, 0 }
   0xd   : > { %p1358_p8 = pnand %p825_p5, %p163_p7  ;;  %s175_s28 = sshll.u32 %s1277_s27, 4  ;;  %s1362_s28 = int_to_ptr.vmem [resolvable:$true] %s175_s28 }
   0xe   : > { %s1278_s30 = smov [#allocation7]   ;;  %s1119_s9 = scalar_lea.hbm %s1588_s1, 6144 }
   0xf   : > { %p1053_p9 = pneg %p1358_p8  ;;  %s191_s6 = sshll.u32 %s1278_s30, 4  ;;  %s1373_s6 = int_to_ptr.vmem [resolvable:$true] %s191_s6 }
  0x10   : > { %p1120_p12 = scmp.ne.s32.totalorder %s1588_s1, %s1119_s9  ;;  %p1126_p5 = scmp.lt.u32.totalorder %s1119_s9, %s1588_s1 }
  0x11   : > { %p1369_p11 = pnand %p1053_p9, %p1593_p1 }
  0x13   : > { %p1121_p13 = pneg %p1369_p11 }
  0x15   : > { %p1122_p0 = pnand %p1121_p13, %p1120_p12 }
  0x17   : > { %p1123_p3 = pneg %p1122_p0 }
  0x19   : > { %p1128_p7 = pnand %p1126_p5, %p1123_p3 }
  0x1b   : > { %1131 = shalt.err (!%p1128_p7)
}
  0x1c   : > { %s1132_s14 = scalar_lea.vmem %s1362_s28, 6144  ;;  %p1140_p2 = scmp.lt.s32.totalorder %s1362_s28, %s1362_s28 }
  0x1d   : > { %p1133_p9 = scmp.ne.s32.totalorder %s1362_s28, %s1132_s14  ;;  %p1141_p12 = scmp.lt.s32.totalorder %s1132_s14, %s1132_s14 }
  0x1f   : > { %p1135_p10 = pnand %p1133_p9, %p1121_p13  ;;  %p1142_p0 = por %p1141_p12, %p1140_p2 }
  0x21   : > { %p1136_p1 = pneg %p1135_p10 }
  0x23   : > { %p1143_p6 = pnand %p1142_p0, %p1136_p1 }
  0x25   : > { %1146 = shalt.err (!%p1143_p6)
}
  0x26   : > { %s1279_s15 = smov 384   ;;  %s1280_s16 = smov 24  }
  0x27   : > { %1056 = dma.hbm_to_vmem [thread:$0]  (!%p1369_p11), %s1588_s1, 6144, %s1362_s28, [#allocation6], %s1279_s15, %s1279_s15, %s1280_s16  }
  0x28   : > { %s1147_s7 = scalar_lea.hbm %s1590_s3, 2048 }
  0x29   : > { %p1148_p2 = scmp.ne.s32.totalorder %s1590_s3, %s1147_s7  ;;  %p1154_p10 = scmp.lt.u32.totalorder %s1147_s7, %s1590_s3 }
  0x2b   : > { %p1150_p1 = pnand %p1148_p2, %p1121_p13 }
  0x2d   : > { %p1151_p6 = pneg %p1150_p1 }
  0x2f   : > { %p1156_p3 = pnand %p1154_p10, %p1151_p6 }
  0x31   : > { %1159 = shalt.err (!%p1156_p3)
}
  0x32   : > { %s1160_s28 = scalar_lea.vmem %s1373_s6, 2048  ;;  %p1168_p12 = scmp.lt.s32.totalorder %s1373_s6, %s1373_s6 }
  0x33   : > { %p1161_p5 = scmp.ne.s32.totalorder %s1373_s6, %s1160_s28  ;;  %p1169_p0 = scmp.lt.s32.totalorder %s1160_s28, %s1160_s28 }
  0x35   : > { %p1163_p7 = pnand %p1161_p5, %p1121_p13  ;;  %p1170_p2 = por %p1169_p0, %p1168_p12 }
  0x37   : > { %p1164_p9 = pneg %p1163_p7 }
  0x39   : > { %p1171_p1 = pnand %p1170_p2, %p1164_p9 }
  0x3b   : > { %1174 = shalt.err (!%p1171_p1)
}
  0x3c   : > { %s1281_s12 = smov 128   ;;  %s1282_s13 = smov 8  }
  0x3d   : > { %1059 = dma.hbm_to_vmem [thread:$0]  (!%p1369_p11), %s1590_s3, 2048, %s1373_s6, [#allocation6], %s1281_s12, %s1281_s12, %s1282_s13  }
  0x3e   : > { %s1428_s16 = sadd.s32 1, %s1275_s21   ;;  %s29_s23 = sadd.s32 1, %s1271_s20 }
  0x3f   : > { %s26_s17 = ssub.s32 %s1275_s21, %s1428_s16  ;;  %p36_p6 = scmp.ne.s32.totalorder %s1271_s20, %s1267_s19 }
  0x40   : > { %p27_p13 = scmp.eq.s32.totalorder %s26_s17, 0  ;;  %p37_p10 = scmp.eq.s32.totalorder %s1275_s21, 0 }
  0x41   : > { %p1600_p5 = scmp.eq.s32.totalorder %s1339_s22, 1  ;;  %p1070_p9 = scmp.lt.s32.totalorder %s1275_s21, 2 }
  0x42   : > { %s1437_s27 = scalar_select %p27_p13, %s1271_s20, %s29_s23  }
  0x43   : > { %p38_p3 = por %p37_p10, %p36_p6  ;;  %p1441_p7 = por %p1600_p5, %p36_p6 }
  0x44   : > { %s208_s29 = sand.u32 1, %s1271_s20   ;;  %s830_s6 = sshll.u32 %s1275_s21, 7 }
  0x45   : > { %s1601_s30 = scalar_select %p1441_p7, 1, 0 }
  0x46   : > { %s829_s7 = sshll.u32 %s208_s29, 3  ;;  %s1451_s10 = scalar_lea.hbm %s1587_s0, %s830_s6 }
  0x47   : > { %s212_s11 = scalar_lea.vmem [#allocation2], %s829_s7  ;;  %p1455_p11 = pnand %p1070_p9, %p38_p3 }
  0x48   : > { %s219_s28 = sshll.u32 %s212_s11, 4  ;;  %s209_s13 = scalar_lea.sflag [#allocation3], %s208_s29  ;;  %s1453_s28 = int_to_ptr.vmem [resolvable:$true] %s219_s28 }
  0x49   : > { %s1175_s14 = scalar_lea.hbm %s1451_s10, 128  ;;  %p1177_p0 = pneg %p1455_p11 }
  0x4a   : > { %p1176_p12 = scmp.ne.s32.totalorder %s1451_s10, %s1175_s14  ;;  %s1180_s23 = scalar_lea.hbm %s1587_s0, 256 }
  0x4b   : > { %p1181_p13 = scmp.lt.u32.totalorder %s1451_s10, %s1587_s0  ;;  %p1182_p6 = scmp.lt.u32.totalorder %s1180_s23, %s1175_s14 }
  0x4c   : > { %p1178_p2 = pnand %p1177_p0, %p1176_p12  ;;  %p1184_p3 = scmp.lt.u32.totalorder %s1175_s14, %s1451_s10 }
  0x4d   : > { %p1183_p10 = por %p1182_p6, %p1181_p13 }
  0x4e   : > { %p1179_p1 = pneg %p1178_p2 }
  0x4f   : > { %p1185_p5 = por %p1184_p3, %p1183_p10 }
  0x51   : > { %p1186_p9 = pnand %p1185_p5, %p1179_p1 }
  0x53   : > { %1189 = shalt.err (!%p1186_p9)
}
  0x54   : > { %s1190_s29 = scalar_lea.vmem %s1453_s28, 128  ;;  %s1283_s8 = smov [#allocation2]  }
  0x55   : > { %p1191_p12 = scmp.ne.s32.totalorder %s1453_s28, %s1190_s29  ;;  %s1195_s9 = sshll.u32 %s1283_s8, 4  ;;  %s1196_s9 = int_to_ptr.vmem [resolvable:$false] %s1195_s9 }
  0x56   : > { %s1197_s11 = scalar_lea.vmem %s1196_s9, 256  ;;  %p1198_p4 = scmp.lt.s32.totalorder %s1453_s28, %s1196_s9 }
  0x57   : > { %p1193_p2 = pnand %p1191_p12, %p1177_p0  ;;  %p1199_p13 = scmp.lt.s32.totalorder %s1197_s11, %s1190_s29 }
  0x59   : > { %p1194_p7 = pneg %p1193_p2  ;;  %p1200_p6 = por %p1199_p13, %p1198_p4 }
  0x5b   : > { %p1201_p10 = pnand %p1200_p6, %p1194_p7 }
  0x5d   : > { %1204 = shalt.err (!%p1201_p10)
}
  0x5e   : > { %1063 = dma.hbm_to_vmem [thread:$0]  (!%p1455_p11), %s1451_s10, 128, %s1453_s28, %s209_s13  }
  0x5f   : > { %228 = sbr.rel (%p1358_p8) target bundleno = 1039 (0x40f), region = 40  ;;  %s1487_s14 = sand.u32 (!%p1358_p8), 1, %s1267_s19  }
  0x60   : > { %s832_s15 = sshll.u32 (!%p1358_p8), %s1487_s14, 3  ;;  %s231_s17 = scalar_lea.sflag (!%p1358_p8), [#allocation3], %s1487_s14 }
  0x61   : > { %s1493_s23 = scalar_lea.vmem (!%p1358_p8), [#allocation2], %s832_s15  ;;  %p1603_p4 = scmp.ne.s32.totalorder (!%p1358_p8), %s1596_s24, 0 }
  0x66   : > { %1250 = dma.done.wait (%p1603_p4), %s231_s17, 128  }
  0x67   : > { %1252 = vsyncadd (%p1603_p4), %s231_s17, 4294967168  ;;  %p1604_p7 = scmp.eq.s32.totalorder %s1339_s22, 0 }
  0x69   : > { %1254 = dma.done.wait (%p1604_p7), [#allocation6], 8192   ;;  %p1605_p8 = pmov %p1604_p7 }
  0x6a   : > { %v1284_v0 = vmov 0.0   ;;  %v1285_v1 = vmov 0.0|0.0   ;;  %v271_v2 = vld [vmem:[#allocation5 + $0x8] sm:$0xff]  ;;  %v274_v3 = vld [vmem:[#allocation5 + $0x20] sm:$0xff]  ;;  %v273_v6 = vld [vmem:[#allocation5 + $0x18] sm:$0xff]  ;;  %vm1286_vm0 = vmmov 0  }
  0x6b   : > { %1256 = vsyncadd (%p1605_p8), [#allocation6], 4294959104  ;;  %399 = vmatprep.mubr.f32.mxu0 %v1284_v0  ;;  %993 = vmatprep.subr.bf16.mxu1 %v1285_v1  ;;  %v270_v4 = vld [vmem:[#allocation5] sm:$0xff]  ;;  %v961_v5 = vpack.c.bf16 %v274_v3, %v271_v2  ;;  %v277_v7 = vld [vmem:[#allocation5 + $0x38] sm:$0xff]  ;;  %vm553_vm1 = vcmask 64512   ;;  %s840_s12 = sshll.u32 %s1339_s22, 7 }
  0x6c   : > { %v280_v8 = vld [vmem:[#allocation5 + $0x50] sm:$0xff]  ;;  %v963_v9 = vpack.c.bf16 %v273_v6, %v270_v4  ;;  %v279_v12 = vld [vmem:[#allocation5 + $0x48] sm:$0xff]  ;;  %v286_v14 = vld [vmem:[#allocation5 + $0x80] sm:$0xff]  ;;  %913 = vmatprep.mubr.msk.f32.mxu1 %vm1286_vm0, %v1284_v0  ;;  %s268_s13 = scalar_lea.vmem [#allocation8], %s832_s15  ;;  %s1543_s8 = scalar_lea.hbm %s1592_s5, %s840_s12 }
  0x6d   : > { %v965_v10 = vpack.c.bf16 %v280_v8, %v277_v7  ;;  %v276_v11 = vld [vmem:[#allocation5 + $0x30] sm:$0xff]  ;;  %v283_v13 = vld [vmem:[#allocation5 + $0x68] sm:$0xff]  ;;  %962 = vmatprep.subr.bf16.mxu0 %v961_v5  ;;  %v282_v17 = vld [vmem:[#allocation5 + $0x60] sm:$0xff]  ;;  %s735_s7 = sshll.u32 %s268_s13, 4  ;;  %s722_s9 = scalar_lea.sflag [#allocation4], %s1487_s14  ;;  %s1545_s7 = int_to_ptr.vmem [resolvable:$true] %s735_s7 }
  0x6e   : > { %964 = vmatpush1.bf16.msra.mxu0 %v963_v9  ;;  %v967_v15 = vpack.c.bf16 %v279_v12, %v276_v11  ;;  %v969_v16 = vpack.c.bf16 %v286_v14, %v283_v13  ;;  %v285_v18 = vld [vmem:[#allocation5 + $0x78] sm:$0xff]  ;;  %v292_v20 = vld [vmem:[#allocation5 + $0xb0] sm:$0xff]  ;;  %v291_v24 = vld [vmem:[#allocation5 + $0xa8] sm:$0xff]  ;;  %v320_v13 = vlaneseq  ;;  %s1205_s11 = scalar_lea.vmem %s1545_s7, 128  ;;  %p1606_p0 = scmp.ne.s32.totalorder %s1601_s30, 0 }
  0x6f   : > { %966 = vmatprep.subr.bf16.mxu0 %v965_v10  ;;  %v289_v19 = vld [vmem:[#allocation5 + $0x98] sm:$0xff]  ;;  %v971_v21 = vpack.c.bf16 %v285_v18, %v282_v17  ;;  %v288_v23 = vld [vmem:[#allocation5 + $0x90] sm:$0xff]  ;;  %v295_v25 = vld [vmem:[#allocation5 + $0xc8] sm:$0xff]  ;;  %p1206_p11 = scmp.ne.s32.totalorder %s1545_s7, %s1205_s11  ;;  %s1287_s22 = smov [#allocation8]  }
  0x70   : > { %v973_v22 = vpack.c.bf16 %v292_v20, %v289_v19  ;;  %v298_v26 = vld [vmem:[#allocation5 + $0xe0] sm:$0xff]  ;;  %v272_v27 = vld [vmem:[#allocation5 + $0x10] sm:$0xff]  ;;  %v275_v28 = vld [vmem:[#allocation5 + $0x28] sm:$0xff]  ;;  %v975_v30 = vpack.c.bf16 %v291_v24, %v288_v23  ;;  %v321_v14 = vshrl.u32 %v320_v13, 7  ;;  %s1209_s15 = sshll.u32 %s1287_s22, 4  ;;  %s1210_s15 = int_to_ptr.vmem [resolvable:$false] %s1209_s15 }
  0x71   : > { %v278_v29 = vld [vmem:[#allocation5 + $0x40] sm:$0xff]  ;;  %v994_v31 = vpack.c.bf16 %v275_v28, %v272_v27  ;;  %v281_v32 = vld [vmem:[#allocation5 + $0x58] sm:$0xff]  ;;  %v977_v33 = vpack.c.bf16 %v298_v26, %v295_v25  ;;  %v304_v37 = vld [vmem:[#allocation5 + $0x110] sm:$0xff]  ;;  %p1207_p1 = pnand %p1206_p11, %p1606_p0  ;;  %s1211_s17 = scalar_lea.vmem %s1210_s15, 256 }
  0x72   : > { %968 = vmatpush1.bf16.msra.mxu0 %v967_v15  ;;  %v294_v34 = vld [vmem:[#allocation5 + $0xc0] sm:$0xff]  ;;  %v297_v35 = vld [vmem:[#allocation5 + $0xd8] sm:$0xff]  ;;  %v997_v38 = vpack.c.bf16 %v281_v32, %v278_v29  ;;  %v284_v39 = vld [vmem:[#allocation5 + $0x70] sm:$0xff]  ;;  %v326_v15 = vsub.s32 1, %v321_v14  ;;  %v322_v17 = vsub.s32 0, %v321_v14  ;;  %v330_v24 = vsub.s32 2, %v321_v14  ;;  %p1212_p5 = scmp.lt.s32.totalorder %s1545_s7, %s1210_s15  ;;  %p1213_p9 = scmp.lt.s32.totalorder %s1211_s17, %s1205_s11 }
  0x73   : > { %970 = vmatprep.subr.bf16.mxu0 %v969_v16  ;;  %v301_v36 = vld [vmem:[#allocation5 + $0xf8] sm:$0xff]  ;;  %995 = vmatpush3.bf16.msra.mxu1 %v994_v31  ;;  %v287_v40 = vld [vmem:[#allocation5 + $0x88] sm:$0xff]  ;;  %v979_v41 = vpack.c.bf16 %v297_v35, %v294_v34  ;;  %v300_v43 = vld [vmem:[#allocation5 + $0xf0] sm:$0xff]  ;;  %p1208_p3 = pneg %p1207_p1 }
  0x74   : > { %996 = vmatprep.subr.bf16.mxu1 %v1285_v1  ;;  %v981_v42 = vpack.c.bf16 %v304_v37, %v301_v36  ;;  %v303_v44 = vld [vmem:[#allocation5 + $0x108] sm:$0xff]  ;;  %v310_v46 = vld [vmem:[#allocation5 + $0x140] sm:$0xff]  ;;  %v1000_v47 = vpack.c.bf16 %v287_v40, %v284_v39  ;;  %v293_v49 = vld [vmem:[#allocation5 + $0xb8] sm:$0xff]  ;;  %p1214_p12 = por %p1213_p9, %p1212_p5 }
  0x75   : > { %v307_v45 = vld [vmem:[#allocation5 + $0x128] sm:$0xff]  ;;  %v290_v48 = vld [vmem:[#allocation5 + $0xa0] sm:$0xff]  ;;  %v983_v50 = vpack.c.bf16 %v303_v44, %v300_v43  ;;  %v309_v53 = vld [vmem:[#allocation5 + $0x138] sm:$0xff] }
  0x76   : > { %972 = vmatpush1.bf16.msra.mxu0 %v971_v21  ;;  %v985_v51 = vpack.c.bf16 %v310_v46, %v307_v45  ;;  %v306_v52 = vld [vmem:[#allocation5 + $0x120] sm:$0xff]  ;;  %v313_v54 = vld [vmem:[#allocation5 + $0x158] sm:$0xff]  ;;  %v316_v55 = vld [vmem:[#allocation5 + $0x170] sm:$0xff]  ;;  %v1003_v56 = vpack.c.bf16 %v293_v49, %v290_v48  ;;  %p1215_p2 = pnand %p1214_p12, %p1208_p3 }
  0x77   : > { %974 = vmatprep.subr.bf16.mxu0 %v973_v22  ;;  %998 = vmatpush3.bf16.msra.mxu1 %v997_v38  ;;  %v296_v57 = vld [vmem:[#allocation5 + $0xd0] sm:$0xff]  ;;  %v299_v58 = vld [vmem:[#allocation5 + $0xe8] sm:$0xff]  ;;  %v987_v59 = vpack.c.bf16 %v309_v53, %v306_v52  ;;  %v989_v60 = vpack.c.bf16 %v316_v55, %v313_v54  ;;  %v302_v2 = vld [vmem:[#allocation5 + $0x100] sm:$0xff] }
  0x78   : > { %999 = vmatprep.subr.bf16.mxu1 %v1285_v1  ;;  %v312_v61 = vld [vmem:[#allocation5 + $0x150] sm:$0xff]  ;;  %v315_v62 = vld [vmem:[#allocation5 + $0x168] sm:$0xff]  ;;  %v1006_v63 = vpack.c.bf16 %v299_v58, %v296_v57  ;;  %v305_v3 = vld [vmem:[#allocation5 + $0x118] sm:$0xff] }
  0x79   : > { %v991_v4 = vpack.c.bf16 %v315_v62, %v312_v61  ;;  %v1009_v5 = vpack.c.bf16 %v305_v3, %v302_v2  ;;  %v308_v6 = vld [vmem:[#allocation5 + $0x130] sm:$0xff]  ;;  %v311_v7 = vld [vmem:[#allocation5 + $0x148] sm:$0xff]  ;;  %v314_v10 = vld [vmem:[#allocation5 + $0x160] sm:$0xff] }
  0x7a   : > { %976 = vmatpush1.bf16.msra.mxu0 %v975_v30  ;;  %v269_v8 = vld [vmem:[%s1493_s23] sm:$0xff]  ;;  %v1012_v9 = vpack.c.bf16 %v311_v7, %v308_v6  ;;  %v627_v29 = vld [vmem:[#allocation7] sm:$0xff]  ;;  %v628_v30 = vld [vmem:[#allocation7 + $0x8] sm:$0xff] }
  0x7b   : > { %978 = vmatprep.subr.bf16.mxu0 %v977_v33  ;;  %1001 = vmatpush3.bf16.msra.mxu1 %v1000_v47  ;;  %v317_v11 = vld [vmem:[#allocation5 + $0x178] sm:$0xff]  ;;  %v318_v16 = vld [vmem:[%s1589_s2] sm:$0x7]  ;;  %v1018_v32 = vpack.c.bf16 %v628_v30, %v627_v29  ;;  %v631_v35 = vld [vmem:[#allocation7 + $0x20] sm:$0xff] }
  0x7c   : > { %1002 = vmatprep.subr.bf16.mxu1 %v1285_v1  ;;  %v1015_v12 = vpack.c.bf16 %v317_v11, %v314_v10  ;;  %v327_v18 = vrot.slane %v318_v16, %v326_v15  ;;  %v323_v20 = vrot.slane %v318_v16, %v322_v17  ;;  %v331_v25 = vrot.slane %v318_v16, %v330_v24  ;;  %v629_v31 = vld [vmem:[#allocation7 + $0x10] sm:$0xff]  ;;  %v630_v33 = vld [vmem:[#allocation7 + $0x18] sm:$0xff]  ;;  %v632_v36 = vld [vmem:[#allocation7 + $0x28] sm:$0xff] }
  0x7d   : > { %v1021_v34 = vpack.c.bf16 %v630_v33, %v629_v31  ;;  %v1024_v37 = vpack.c.bf16 %v632_v36, %v631_v35  ;;  %v634_v38 = vld [vmem:[#allocation7 + $0x38] sm:$0xff]  ;;  %v635_v40 = vld [vmem:[#allocation7 + $0x40] sm:$0xff]  ;;  %v637_v43 = vld [vmem:[#allocation7 + $0x50] sm:$0xff] }
  0x7e   : > { %980 = vmatpush1.bf16.msra.mxu0 %v979_v41  ;;  %v636_v41 = vld [vmem:[#allocation7 + $0x48] sm:$0xff]  ;;  %v638_v44 = vld [vmem:[#allocation7 + $0x58] sm:$0xff]  ;;  %v639_v46 = vld [vmem:[#allocation7 + $0x60] sm:$0xff] }
  0x7f   : > { %982 = vmatprep.subr.bf16.mxu0 %v981_v42  ;;  %1004 = vmatpush3.bf16.msra.mxu1 %v1003_v56  ;;  %v1030_v42 = vpack.c.bf16 %v636_v41, %v635_v40  ;;  %v1033_v45 = vpack.c.bf16 %v638_v44, %v637_v43  ;;  %v640_v47 = vld [vmem:[#allocation7 + $0x68] sm:$0xff]  ;;  %v641_v49 = vld [vmem:[#allocation7 + $0x70] sm:$0xff] }
  0x80   : > { %1005 = vmatprep.subr.bf16.mxu1 %v1285_v1  ;;  %v1036_v48 = vpack.c.bf16 %v640_v47, %v639_v46 }
  0x82   : > { %984 = vmatpush1.bf16.msra.mxu0 %v983_v50  ;;  %v642_v50 = vld [vmem:[#allocation7 + $0x78] sm:$0xff] }
  0x83   : > { %986 = vmatprep.subr.bf16.mxu0 %v985_v51  ;;  %1007 = vmatpush3.bf16.msra.mxu1 %v1006_v63  ;;  %v1039_v51 = vpack.c.bf16 %v642_v50, %v641_v49 }
  0x84   : > { %1008 = vmatprep.subr.bf16.mxu1 %v1285_v1 }
  0x86   : > { %988 = vmatpush1.bf16.msra.mxu0 %v987_v59 }
  0x87   : > { %990 = vmatprep.subr.bf16.mxu0 %v989_v60  ;;  %1010 = vmatpush3.bf16.msra.mxu1 %v1009_v5 }
  0x88   : > { %1011 = vmatprep.subr.bf16.mxu1 %v1285_v1 }
  0x8a   : > { %992 = vmatpush1.bf16.msra.mxu0 %v991_v4 }
  0x8b   : > { %1017 = vmatprep.subr.bf16.mxu0 %v1285_v1  ;;  %1013 = vmatpush3.bf16.msra.mxu1 %v1012_v9 }
  0x8c   : > { %1014 = vmatprep.subr.bf16.mxu1 %v1285_v1 }
  0x8d   : > { %400 = vmatmul.mubr.f32.vlgmr.msra.gmra.mrb[0].mxu0 %v269_v8 }
  0x8e   : > { %958 = vmatprep.mubr.msk.f32.mxu0 %vm1286_vm0, %v1284_v0  ;;  %1019 = vmatpush3.bf16.msra.mxu0 %v1018_v32 }
  0x8f   : > { %1016 = vmatpush3.bf16.msra.mxu1 %v1015_v12  ;;  %1020 = vmatprep.subr.bf16.mxu0 %v1285_v1 }
  0x90   : > { %916 = vmatprep.subr.mxu1 %v1284_v0 }
  0x92   : > { %914 = vmatmul.mubr.f32.vlgmr.msra.gmra.mrb[0].mxu1 %v269_v8  ;;  %1022 = vmatpush3.bf16.msra.mxu0 %v1021_v34 }
  0x93   : > { %918 = vmatprep.mubr.msk.f32.mxu1 %vm1286_vm0, %v1284_v0  ;;  %1023 = vmatprep.subr.bf16.mxu0 %v1285_v1 }
  0x96   : > { %1025 = vmatpush3.bf16.msra.mxu0 %v1024_v37 }
  0x97   : > { %1026 = vmatprep.subr.bf16.mxu0 %v1285_v1 }
 0x160   : > { %v401_v19 = vpop.f32.mrb[0].mxu0 }
 0x161   : > { %v403_v21 = vpop.f32.mrb[1].mxu0  ;;  %v402_v23 = vadd.f32 %v401_v19, %v323_v20 }
 0x162   : > { %v404_v22 = vadd.f32 %v403_v21, %v327_v18 }
 0x164   : > { %917 = vmatpush3.xpose.msra.mxu1 %v404_v22 }
 0x165   : > { %921 = vmatprep.subr.mxu1 %v1284_v0  ;;  %v472_v26 = vpop.f32.mrb[0].mxu1 }
 0x166   : > { %v473_v27 = vadd.f32 %v472_v26, %v331_v25  ;;  %v915_v28 = vpop.f32.mrb[1].mxu1 }
 0x167   : > { %919 = vmatmul.mubr.f32.vlgmr.msra.gmra.mrb[2].mxu1 %v402_v23 }
 0x168   : > { %923 = vmatprep.mubr.msk.f32.mxu1 %vm1286_vm0, %v1284_v0  ;;  %922 = vmatpush3.msra.mxu1 %v473_v27  ;;  %v633_v0 = vld [vmem:[#allocation7 + $0x30] sm:$0xff] }
 0x169   : > { %v1027_v39 = vpack.c.bf16 %v634_v38, %v633_v0 }
 0x16b   : > { %1028 = vmatpush3.bf16.msra.mxu0 %v1027_v39 }
 0x16c   : > { %1029 = vmatprep.subr.bf16.mxu0 %v1285_v1 }
 0x16f   : > { %1031 = vmatpush3.bf16.msra.mxu0 %v1030_v42 }
 0x170   : > { %1032 = vmatprep.subr.bf16.mxu0 %v1285_v1 }
 0x173   : > { %1034 = vmatpush3.bf16.msra.mxu0 %v1033_v45 }
 0x174   : > { %1035 = vmatprep.subr.bf16.mxu0 %v1285_v1 }
 0x177   : > { %1037 = vmatpush3.bf16.msra.mxu0 %v1036_v48 }
 0x178   : > { %1038 = vmatprep.subr.bf16.mxu0 %v1285_v1  ;;  %v838_v1 = vld [vmem:[%s1591_s4] ss:$0 sm:$0xff] }
 0x17b   : > { %1040 = vmatpush3.bf16.msra.mxu0 %v1039_v51 }
 0x23a   : > { %v542_v52 = vpop.f32.mrb[2].mxu1 }
 0x23b   : > { %v836_v53 = vmul.f32 -0.17677669, %v542_v52  ;;  %v920_v54 = vpop.f32.mrb[3].mxu1 }
 0x23d   : > { %v548_v55 = vmul.f32 1.442695, %v836_v53 }
 0x23f   : > { %1115 = vpow2.f32 %v548_v55 }
 0x249   : > { %v1116_v56 = vpop.eup %1115 }
 0x24a   : > { %v550_v57 = vadd.f32 1.0, %v1116_v56 }
 0x24c   : > { %1117 = vrcp.f32 %v550_v57 }
 0x256   : > { %v1118_v58 = vpop.eup %1117 }
 0x257   : > { %924 = vmatmul.mubr.msk.f32.vlgmr.msra.gmra.mrb[4].mxu1 %vm553_vm1, %v1118_v58 }
 0x32a   : > { %v623_v59 = vpop.f32.mrb[4].mxu1 }
 0x32b   : > { %v925_v60 = vpop.f32.mrb[5].mxu1  ;;  %959 = vmatmul.mubr.f32.vlgmr.msra.gmra.mrb[2].mxu0 %v623_v59 }
 0x3fe   : > { %v716_v61 = vpop.f32.mrb[2].mxu0 }
 0x3ff   : > { %v717_v62 = vadd.f32 %v838_v1, %v716_v61  ;;  %v960_v63 = vpop.f32.mrb[3].mxu0 }
 0x401   : > { %720 = vst [vmem:[%s268_s13] sm:$0xff] %v717_v62 }
 0x402   : > { %1218 = shalt.err (!%p1215_p2)
}
 0x403   : > { %s1219_s14 = scalar_lea.hbm %s1543_s8, 128  ;;  %s1223_s26 = scalar_lea.hbm %s1592_s5, 256 }
 0x404   : > { %p1220_p13 = scmp.ne.s32.totalorder %s1543_s8, %s1219_s14  ;;  %p1224_p4 = scmp.lt.u32.totalorder %s1543_s8, %s1592_s5 }
 0x405   : > { %p1225_p7 = scmp.lt.u32.totalorder %s1223_s26, %s1219_s14  ;;  %p1227_p11 = scmp.lt.u32.totalorder %s1219_s14, %s1543_s8 }
 0x406   : > { %p1221_p6 = pnand %p1220_p13, %p1606_p0 }
 0x407   : > { %p1226_p8 = por %p1225_p7, %p1224_p4 }
 0x408   : > { %p1222_p10 = pneg %p1221_p6 }
 0x409   : > { %p1228_p1 = por %p1227_p11, %p1226_p8 }
 0x40b   : > { %p1229_p3 = pnand %p1228_p1, %p1222_p10 }
 0x40d   : > { %1232 = shalt.err (!%p1229_p3)
}
 0x40e   : > { %1051 = dma.vmem_to_hbm [thread:$0]  (%p1606_p0), %s1545_s7, 128, %s1543_s8, %s722_s9  }
 0x40f PF: > { %s747_s12 = sand.u32 1, %s1263_s18   ;;  %p1607_p5 = scmp.ne.s32.totalorder %s1597_s25, 0 }
 0x410   : > { %p1608_p9 = scmp.ge.s32.totalorder %s1275_s21, 2  ;;  %s748_s13 = scalar_lea.sflag [#allocation4], %s747_s12 }
 0x412   : > { %p1065_p12 = pnand %p1608_p9, %p1607_p5 }
 0x414   : > { %1258 = dma.done.wait (!%p1065_p12), %s748_s13, 128  }
 0x415   : > { %1260 = vsyncadd (!%p1065_p12), %s748_s13, 4294967168  ;;  %p19_p2 = scmp.ge.s32.totalorder %s1428_s16, 4   ;;  %s1609_s18 = smov %s1267_s19 }
 0x416   : > { %s1610_s19 = smov %s1271_s20  ;;  %s1611_s20 = smov %s1437_s27 }
 0x417   : > { %s1612_s21 = smov %s1428_s16  ;;  %21 = sbr.rel (!%p19_p2) target bundleno = 6 (0x6), region = 93 }
 0x41e   :  { %753 = vsyncpa [#allocation3], 1 }
 0x41f   :  { %755 = vsyncpa [#allocation3 + $0x1], 1 }
 0x420   :  { %756 = vsyncpa [#allocation6], 1 }
 0x421   :  { %757 = vsyncpa [#allocation4], 1 }
 0x422   :  { %759 = vsyncpa [#allocation4 + $0x1], 1 }

</bundles_post_ra>
